<compile_context>
chip_gen: v6e
topology: v6e:2x2x1
jax: 0.10.0
libtpu: 0.0.40
codegen_flags: <defaults>
</compile_context>

<pallas_src>
import functools
import math

import jax
import jax.numpy as jnp
from jax.experimental import pallas as pl
from jax.experimental.pallas import tpu as pltpu


# ---------------------------------------------------------------------------
# Kernel
# ---------------------------------------------------------------------------
def mapping_network_kernel(x_ref, w_ref, v_ref, out_ref, *,
                           activations, bn_eps, num_layers):
    """x_ref: [B, F]; w_ref: [L, F, F] (pre-transposed, gain-baked);
    v_ref: [L+2, F] (gamma, beta, bias_0..bias_{L-1}); out_ref: [B, F]."""
    x = x_ref[...]

    # --- BatchNorm1d (training-mode forward: per-feature batch stats, biased var) ---
    mean = jnp.mean(x, axis=0, keepdims=True)
    var = jnp.mean(jnp.square(x - mean), axis=0, keepdims=True)
    x = (x - mean) * jax.lax.rsqrt(var + bn_eps)
    x = x * v_ref[0:1, :] + v_ref[1:2, :]

    # --- stack of FullyConnectedLayer: x @ W_i + b_i, LeakyReLU(0.2) ---
    for i in range(num_layers):
        x = jnp.dot(x, w_ref[i], preferred_element_type=jnp.float32)
        x = x + v_ref[2 + i:3 + i, :]
        if activations[i]:
            x = jnp.maximum(x, 0.2 * x)  # LeakyReLU(negative_slope=0.2)

    out_ref[...] = x


# ---------------------------------------------------------------------------
# Parameter construction (matches MappingNetwork.__init__ semantics)
# ---------------------------------------------------------------------------
def init_mapping_network_params(key, input_dim, output_dim, hidden_dim=-1,
                                num_layers=8, lr_multiplier=0.01):
    """PyTorch-convention params: weights [out,in], biases [out], gains."""
    if hidden_dim < 0:
        hidden_dim = output_dim
    feats = [input_dim] + [hidden_dim] * (num_layers - 1) + [output_dim]
    weights, biases, weight_gains = [], [], []
    for idx in range(num_layers):
        key, sub = jax.random.split(key)
        in_d, out_d = feats[idx], feats[idx + 1]
        w = jax.random.normal(sub, (out_d, in_d), jnp.float32) * (1.0 / lr_multiplier)
        b = jnp.zeros((out_d,), jnp.float32)
        weights.append(w)
        biases.append(b)
        weight_gains.append(lr_multiplier / math.sqrt(in_d))
    gamma = jnp.ones((input_dim,), jnp.float32)   # BatchNorm1d weight
    beta = jnp.zeros((input_dim,), jnp.float32)   # BatchNorm1d bias
    return weights, biases, weight_gains, gamma, beta


def pack_mapping_network_params(weights, biases, weight_gains, gamma, beta,
                                lr_multiplier=0.01):
    """One-time packing into kernel-ready arrays (done once, not per call).

    Weights are transposed to [in_dim, out_dim], scaled by their weight_gain,
    and zero-padded to a common feature width F; biases are scaled by the bias
    gain (lr_multiplier). Zero padding is exact: padded columns stay zero
    through BN and every layer.
    """
    num_layers = len(weights)
    F = max([gamma.shape[0]] + [max(w.shape) for w in weights])

    w_stack = jnp.zeros((num_layers, F, F), jnp.float32)
    for i, (w, g) in enumerate(zip(weights, weight_gains)):
        out_d, in_d = w.shape
        wt = (w.astype(jnp.float32) * float(g)).T       # [in_d, out_d]
        w_stack = w_stack.at[i, :in_d, :out_d].set(wt)

    vec = jnp.zeros((num_layers + 2, F), jnp.float32)
    vec = vec.at[0, :].set(1.0)                          # gamma padding = 1
    vec = vec.at[0, :gamma.shape[0]].set(gamma.astype(jnp.float32))
    vec = vec.at[1, :beta.shape[0]].set(beta.astype(jnp.float32))
    for i, b in enumerate(biases):
        vec = vec.at[2 + i, :b.shape[0]].set(
            b.astype(jnp.float32) * float(lr_multiplier))

    return w_stack, vec, F


# ---------------------------------------------------------------------------
# Forward wrapper
# ---------------------------------------------------------------------------
def mapping_network_forward(x, w_stack, vec_params, *, output_dim,
                            final_activation=True, bn_eps=1e-5):
    batch = x.shape[0]
    num_layers, F, _ = w_stack.shape
    activations = tuple(True if i < num_layers - 2 else bool(final_activation)
                        for i in range(num_layers))

    x_pad = x.astype(jnp.float32)
    if x_pad.shape[1] < F:
        x_pad = jnp.pad(x_pad, ((0, 0), (0, F - x_pad.shape[1])))

    kernel = functools.partial(
        mapping_network_kernel,
        activations=activations,
        bn_eps=float(bn_eps),
        num_layers=num_layers,
    )

    vmem = pl.BlockSpec(memory_space=pltpu.MemorySpace.VMEM)
    out = pl.pallas_call(
        kernel,
        out_shape=jax.ShapeDtypeStruct((batch, F), jnp.float32),
        in_specs=[vmem, vmem, vmem],
        out_specs=vmem,
    )(x_pad, w_stack, vec_params)

    return out[:, :output_dim]


# ---------------------------------------------------------------------------
# Pure-JAX reference mirroring the PyTorch forward (training-mode BN, f32)
# ---------------------------------------------------------------------------
def reference_forward(x, weights, biases, weight_gains, gamma, beta,
                      final_activation=True, lr_multiplier=0.01, bn_eps=1e-5):
    x = x.astype(jnp.float32)
    mean = jnp.mean(x, axis=0, keepdims=True)
    var = jnp.mean((x - mean) ** 2, axis=0, keepdims=True)
    x = (x - mean) * jax.lax.rsqrt(var + bn_eps) * gamma + beta
    n = len(weights)
    for i, (w, b, g) in enumerate(zip(weights, biases, weight_gains)):
        x = x @ (w * g).T + b * lr_multiplier
        if (True if i < n - 2 else final_activation):
            x = jnp.where(x >= 0, x, 0.2 * x)
    return x


if __name__ == "__main__":
    # Small shapes: batch=8, input_dim=hidden_dim=output_dim=32, num_layers=8.
    INPUT_DIM = 32
    OUTPUT_DIM = 32
    BATCH = 8
    NUM_LAYERS = 8
    LR_MULT = 0.01

    key = jax.random.PRNGKey(0)
    kx, kp = jax.random.split(key)
    x = jax.random.normal(kx, (BATCH, INPUT_DIM), jnp.float32)

    weights, biases, gains, gamma, beta = init_mapping_network_params(
        kp, INPUT_DIM, OUTPUT_DIM, hidden_dim=-1, num_layers=NUM_LAYERS,
        lr_multiplier=LR_MULT)

    # One-time pack (transpose + gain bake + DMA-friendly concatenation).
    w_stack, vec_params, _ = pack_mapping_network_params(
        weights, biases, gains, gamma, beta, lr_multiplier=LR_MULT)

    out = mapping_network_forward(x, w_stack, vec_params,
                                  output_dim=OUTPUT_DIM, final_activation=True)
    out = jax.block_until_ready(out)

    ref = reference_forward(x, weights, biases, gains, gamma, beta,
                            final_activation=True, lr_multiplier=LR_MULT)
    assert out.shape == (BATCH, OUTPUT_DIM)
    assert jnp.allclose(out, ref, rtol=2e-3, atol=2e-3), "mismatch vs reference"

    # TODO(synk): BatchNorm1d running_mean/running_var updates and the unused
    # w_avg buffer are stateful bookkeeping outside the forward math modeled here.
    print("KERNEL_OK")
</pallas_src>

<mosaic_0001>
module attributes {stable_mosaic.version = 11 : i64} {
  func.func @mapping_network_kernel(%arg0: memref<8x32xf32, #tpu.memory_space<vmem>>, %arg1: memref<8x32x32xf32, #tpu.memory_space<vmem>>, %arg2: memref<10x32xf32, #tpu.memory_space<vmem>>, %arg3: memref<8x32xf32, #tpu.memory_space<vmem>>) attributes {dimension_semantics = [], scalar_prefetch = 0 : i64, scratch_operands = 0 : i64, tpu.core_type = #tpu.core_type<tc>} {
    %c0 = arith.constant 0 : index
    %c0_0 = arith.constant 0 : index
    %0 = vector.load %arg0[%c0, %c0_0] : memref<8x32xf32, #tpu.memory_space<vmem>>, vector<8x32xf32>
    %cst = arith.constant dense<0.000000e+00> : vector<32xf32>
    %1 = vector.multi_reduction <add>, %0, %cst [0] : vector<8x32xf32> to vector<32xf32>
    %2 = vector.shape_cast %1 : vector<32xf32> to vector<1x32xf32>
    %cst_1 = arith.constant 8.000000e+00 : f32
    %3 = vector.broadcast %cst_1 : f32 to vector<1x32xf32>
    %4 = arith.divf %2, %3 : vector<1x32xf32>
    %5 = vector.broadcast %4 : vector<1x32xf32> to vector<8x32xf32>
    %6 = arith.subf %0, %5 : vector<8x32xf32>
    %7 = arith.mulf %6, %6 : vector<8x32xf32>
    %cst_2 = arith.constant dense<0.000000e+00> : vector<32xf32>
    %8 = vector.multi_reduction <add>, %7, %cst_2 [0] : vector<8x32xf32> to vector<32xf32>
    %9 = vector.shape_cast %8 : vector<32xf32> to vector<1x32xf32>
    %cst_3 = arith.constant 8.000000e+00 : f32
    %10 = vector.broadcast %cst_3 : f32 to vector<1x32xf32>
    %11 = arith.divf %9, %10 : vector<1x32xf32>
    %12 = vector.broadcast %4 : vector<1x32xf32> to vector<8x32xf32>
    %13 = arith.subf %0, %12 : vector<8x32xf32>
    %cst_4 = arith.constant 9.99999974E-6 : f32
    %14 = vector.broadcast %cst_4 : f32 to vector<1x32xf32>
    %15 = arith.addf %11, %14 : vector<1x32xf32>
    %16 = math.rsqrt %15 : vector<1x32xf32>
    %17 = vector.broadcast %16 : vector<1x32xf32> to vector<8x32xf32>
    %18 = arith.mulf %13, %17 : vector<8x32xf32>
    %c0_5 = arith.constant 0 : index
    %c0_6 = arith.constant 0 : index
    %19 = vector.load %arg2[%c0_5, %c0_6] : memref<10x32xf32, #tpu.memory_space<vmem>>, vector<1x32xf32>
    %20 = vector.broadcast %19 : vector<1x32xf32> to vector<8x32xf32>
    %21 = arith.mulf %18, %20 : vector<8x32xf32>
    %c1 = arith.constant 1 : index
    %c0_7 = arith.constant 0 : index
    %22 = vector.load %arg2[%c1, %c0_7] : memref<10x32xf32, #tpu.memory_space<vmem>>, vector<1x32xf32>
    %23 = vector.broadcast %22 : vector<1x32xf32> to vector<8x32xf32>
    %24 = arith.addf %21, %23 : vector<8x32xf32>
    %c0_8 = arith.constant 0 : index
    %c0_9 = arith.constant 0 : index
    %c0_10 = arith.constant 0 : index
    %25 = vector.load %arg1[%c0_8, %c0_9, %c0_10] : memref<8x32x32xf32, #tpu.memory_space<vmem>>, vector<1x32x32xf32>
    %26 = vector.shape_cast %25 : vector<1x32x32xf32> to vector<32x32xf32>
    %cst_11 = arith.constant dense<0.000000e+00> : vector<8x32xf32>
    %27 = tpu.matmul %24, %26, %cst_11 {dimension_numbers = #tpu.dot_dimension_numbers<[1], [0], [0], [1], [0, 0, 1, 1], [], []>} : vector<8x32xf32>, vector<32x32xf32>, vector<8x32xf32> -> vector<8x32xf32>
    %c2 = arith.constant 2 : index
    %c0_12 = arith.constant 0 : index
    %28 = vector.load %arg2[%c2, %c0_12] : memref<10x32xf32, #tpu.memory_space<vmem>>, vector<1x32xf32>
    %29 = vector.broadcast %28 : vector<1x32xf32> to vector<8x32xf32>
    %30 = arith.addf %27, %29 : vector<8x32xf32>
    %cst_13 = arith.constant 2.000000e-01 : f32
    %31 = vector.broadcast %cst_13 : f32 to vector<8x32xf32>
    %32 = arith.mulf %31, %30 : vector<8x32xf32>
    %33 = arith.maximumf %30, %32 : vector<8x32xf32>
    %c1_14 = arith.constant 1 : index
    %c0_15 = arith.constant 0 : index
    %c0_16 = arith.constant 0 : index
    %34 = vector.load %arg1[%c1_14, %c0_15, %c0_16] : memref<8x32x32xf32, #tpu.memory_space<vmem>>, vector<1x32x32xf32>
    %35 = vector.shape_cast %34 : vector<1x32x32xf32> to vector<32x32xf32>
    %cst_17 = arith.constant dense<0.000000e+00> : vector<8x32xf32>
    %36 = tpu.matmul %33, %35, %cst_17 {dimension_numbers = #tpu.dot_dimension_numbers<[1], [0], [0], [1], [0, 0, 1, 1], [], []>} : vector<8x32xf32>, vector<32x32xf32>, vector<8x32xf32> -> vector<8x32xf32>
    %c3 = arith.constant 3 : index
    %c0_18 = arith.constant 0 : index
    %37 = vector.load %arg2[%c3, %c0_18] : memref<10x32xf32, #tpu.memory_space<vmem>>, vector<1x32xf32>
    %38 = vector.broadcast %37 : vector<1x32xf32> to vector<8x32xf32>
    %39 = arith.addf %36, %38 : vector<8x32xf32>
    %cst_19 = arith.constant 2.000000e-01 : f32
    %40 = vector.broadcast %cst_19 : f32 to vector<8x32xf32>
    %41 = arith.mulf %40, %39 : vector<8x32xf32>
    %42 = arith.maximumf %39, %41 : vector<8x32xf32>
    %c2_20 = arith.constant 2 : index
    %c0_21 = arith.constant 0 : index
    %c0_22 = arith.constant 0 : index
    %43 = vector.load %arg1[%c2_20, %c0_21, %c0_22] : memref<8x32x32xf32, #tpu.memory_space<vmem>>, vector<1x32x32xf32>
    %44 = vector.shape_cast %43 : vector<1x32x32xf32> to vector<32x32xf32>
    %cst_23 = arith.constant dense<0.000000e+00> : vector<8x32xf32>
    %45 = tpu.matmul %42, %44, %cst_23 {dimension_numbers = #tpu.dot_dimension_numbers<[1], [0], [0], [1], [0, 0, 1, 1], [], []>} : vector<8x32xf32>, vector<32x32xf32>, vector<8x32xf32> -> vector<8x32xf32>
    %c4 = arith.constant 4 : index
    %c0_24 = arith.constant 0 : index
    %46 = vector.load %arg2[%c4, %c0_24] : memref<10x32xf32, #tpu.memory_space<vmem>>, vector<1x32xf32>
    %47 = vector.broadcast %46 : vector<1x32xf32> to vector<8x32xf32>
    %48 = arith.addf %45, %47 : vector<8x32xf32>
    %cst_25 = arith.constant 2.000000e-01 : f32
    %49 = vector.broadcast %cst_25 : f32 to vector<8x32xf32>
    %50 = arith.mulf %49, %48 : vector<8x32xf32>
    %51 = arith.maximumf %48, %50 : vector<8x32xf32>
    %c3_26 = arith.constant 3 : index
    %c0_27 = arith.constant 0 : index
    %c0_28 = arith.constant 0 : index
    %52 = vector.load %arg1[%c3_26, %c0_27, %c0_28] : memref<8x32x32xf32, #tpu.memory_space<vmem>>, vector<1x32x32xf32>
    %53 = vector.shape_cast %52 : vector<1x32x32xf32> to vector<32x32xf32>
    %cst_29 = arith.constant dense<0.000000e+00> : vector<8x32xf32>
    %54 = tpu.matmul %51, %53, %cst_29 {dimension_numbers = #tpu.dot_dimension_numbers<[1], [0], [0], [1], [0, 0, 1, 1], [], []>} : vector<8x32xf32>, vector<32x32xf32>, vector<8x32xf32> -> vector<8x32xf32>
    %c5 = arith.constant 5 : index
    %c0_30 = arith.constant 0 : index
    %55 = vector.load %arg2[%c5, %c0_30] : memref<10x32xf32, #tpu.memory_space<vmem>>, vector<1x32xf32>
    %56 = vector.broadcast %55 : vector<1x32xf32> to vector<8x32xf32>
    %57 = arith.addf %54, %56 : vector<8x32xf32>
    %cst_31 = arith.constant 2.000000e-01 : f32
    %58 = vector.broadcast %cst_31 : f32 to vector<8x32xf32>
    %59 = arith.mulf %58, %57 : vector<8x32xf32>
    %60 = arith.maximumf %57, %59 : vector<8x32xf32>
    %c4_32 = arith.constant 4 : index
    %c0_33 = arith.constant 0 : index
    %c0_34 = arith.constant 0 : index
    %61 = vector.load %arg1[%c4_32, %c0_33, %c0_34] : memref<8x32x32xf32, #tpu.memory_space<vmem>>, vector<1x32x32xf32>
    %62 = vector.shape_cast %61 : vector<1x32x32xf32> to vector<32x32xf32>
    %cst_35 = arith.constant dense<0.000000e+00> : vector<8x32xf32>
    %63 = tpu.matmul %60, %62, %cst_35 {dimension_numbers = #tpu.dot_dimension_numbers<[1], [0], [0], [1], [0, 0, 1, 1], [], []>} : vector<8x32xf32>, vector<32x32xf32>, vector<8x32xf32> -> vector<8x32xf32>
    %c6 = arith.constant 6 : index
    %c0_36 = arith.constant 0 : index
    %64 = vector.load %arg2[%c6, %c0_36] : memref<10x32xf32, #tpu.memory_space<vmem>>, vector<1x32xf32>
    %65 = vector.broadcast %64 : vector<1x32xf32> to vector<8x32xf32>
    %66 = arith.addf %63, %65 : vector<8x32xf32>
    %cst_37 = arith.constant 2.000000e-01 : f32
    %67 = vector.broadcast %cst_37 : f32 to vector<8x32xf32>
    %68 = arith.mulf %67, %66 : vector<8x32xf32>
    %69 = arith.maximumf %66, %68 : vector<8x32xf32>
    %c5_38 = arith.constant 5 : index
    %c0_39 = arith.constant 0 : index
    %c0_40 = arith.constant 0 : index
    %70 = vector.load %arg1[%c5_38, %c0_39, %c0_40] : memref<8x32x32xf32, #tpu.memory_space<vmem>>, vector<1x32x32xf32>
    %71 = vector.shape_cast %70 : vector<1x32x32xf32> to vector<32x32xf32>
    %cst_41 = arith.constant dense<0.000000e+00> : vector<8x32xf32>
    %72 = tpu.matmul %69, %71, %cst_41 {dimension_numbers = #tpu.dot_dimension_numbers<[1], [0], [0], [1], [0, 0, 1, 1], [], []>} : vector<8x32xf32>, vector<32x32xf32>, vector<8x32xf32> -> vector<8x32xf32>
    %c7 = arith.constant 7 : index
    %c0_42 = arith.constant 0 : index
    %73 = vector.load %arg2[%c7, %c0_42] : memref<10x32xf32, #tpu.memory_space<vmem>>, vector<1x32xf32>
    %74 = vector.broadcast %73 : vector<1x32xf32> to vector<8x32xf32>
    %75 = arith.addf %72, %74 : vector<8x32xf32>
    %cst_43 = arith.constant 2.000000e-01 : f32
    %76 = vector.broadcast %cst_43 : f32 to vector<8x32xf32>
    %77 = arith.mulf %76, %75 : vector<8x32xf32>
    %78 = arith.maximumf %75, %77 : vector<8x32xf32>
    %c6_44 = arith.constant 6 : index
    %c0_45 = arith.constant 0 : index
    %c0_46 = arith.constant 0 : index
    %79 = vector.load %arg1[%c6_44, %c0_45, %c0_46] : memref<8x32x32xf32, #tpu.memory_space<vmem>>, vector<1x32x32xf32>
    %80 = vector.shape_cast %79 : vector<1x32x32xf32> to vector<32x32xf32>
    %cst_47 = arith.constant dense<0.000000e+00> : vector<8x32xf32>
    %81 = tpu.matmul %78, %80, %cst_47 {dimension_numbers = #tpu.dot_dimension_numbers<[1], [0], [0], [1], [0, 0, 1, 1], [], []>} : vector<8x32xf32>, vector<32x32xf32>, vector<8x32xf32> -> vector<8x32xf32>
    %c8 = arith.constant 8 : index
    %c0_48 = arith.constant 0 : index
    %82 = vector.load %arg2[%c8, %c0_48] : memref<10x32xf32, #tpu.memory_space<vmem>>, vector<1x32xf32>
    %83 = vector.broadcast %82 : vector<1x32xf32> to vector<8x32xf32>
    %84 = arith.addf %81, %83 : vector<8x32xf32>
    %cst_49 = arith.constant 2.000000e-01 : f32
    %85 = vector.broadcast %cst_49 : f32 to vector<8x32xf32>
    %86 = arith.mulf %85, %84 : vector<8x32xf32>
    %87 = arith.maximumf %84, %86 : vector<8x32xf32>
    %c7_50 = arith.constant 7 : index
    %c0_51 = arith.constant 0 : index
    %c0_52 = arith.constant 0 : index
    %88 = vector.load %arg1[%c7_50, %c0_51, %c0_52] : memref<8x32x32xf32, #tpu.memory_space<vmem>>, vector<1x32x32xf32>
    %89 = vector.shape_cast %88 : vector<1x32x32xf32> to vector<32x32xf32>
    %cst_53 = arith.constant dense<0.000000e+00> : vector<8x32xf32>
    %90 = tpu.matmul %87, %89, %cst_53 {dimension_numbers = #tpu.dot_dimension_numbers<[1], [0], [0], [1], [0, 0, 1, 1], [], []>} : vector<8x32xf32>, vector<32x32xf32>, vector<8x32xf32> -> vector<8x32xf32>
    %c9 = arith.constant 9 : index
    %c0_54 = arith.constant 0 : index
    %91 = vector.load %arg2[%c9, %c0_54] : memref<10x32xf32, #tpu.memory_space<vmem>>, vector<1x32xf32>
    %92 = vector.broadcast %91 : vector<1x32xf32> to vector<8x32xf32>
    %93 = arith.addf %90, %92 : vector<8x32xf32>
    %cst_55 = arith.constant 2.000000e-01 : f32
    %94 = vector.broadcast %cst_55 : f32 to vector<8x32xf32>
    %95 = arith.mulf %94, %93 : vector<8x32xf32>
    %96 = arith.maximumf %93, %95 : vector<8x32xf32>
    %c0_56 = arith.constant 0 : index
    %c0_57 = arith.constant 0 : index
    %97 = vector.load %arg3[%c0_56, %c0_57] : memref<8x32xf32, #tpu.memory_space<vmem>>, vector<8x32xf32>
    tpu.vector_store %arg3[%c0_56, %c0_57], %96 {strides = array<i32>} : memref<8x32xf32, #tpu.memory_space<vmem>>, vector<8x32xf32>,
    return
  }
}

</mosaic_0001>

<bundles_post_ra>
// kernel: tpu_custom_call.1
= control target key start
LH: loop header
LB: loop body
LE: loop exit
PB: predicated region body
PF: predicated region fallthrough
CT: control target
= control target key end

     0   :  { %8 = vsyncpa [#allocation3], 0  ;;  %s1127_s0 = inlined_call_operand.hbm [shape: f32[8,32], index: 0, kind: input, shape index: {}]   ;;  %s1128_s1 = inlined_call_operand.hbm [shape: f32[8,32,32], index: 1, kind: input, shape index: {}]   ;;  %s1129_s2 = inlined_call_operand.hbm [shape: f32[10,32], index: 2, kind: input, shape index: {}]   ;;  %s1130_s3 = inlined_call_operand.hbm [shape: f32[8,32], index: 3, kind: output, shape index: {}]  }
   0x1   :  { %9 = vsyncpa [#allocation6], 0 }
   0x2   :  { %10 = vsyncpa [#allocation4], 0  ;;  %s1028_s12 = smov [#allocation5]  }
   0x3   :  { %s26_s13 = sshll.u32 %s1028_s12, 4  ;;  %s27_s13 = int_to_ptr.vmem [resolvable:$true] %s26_s13 }
   0x4   :  { %s950_s14 = scalar_lea.vmem %s27_s13, 4096  ;;  %p955_p1 = scmp.lt.s32.totalorder %s27_s13, %s27_s13 }
   0x5   :  { %p951_p0 = scmp.ne.s32.totalorder %s27_s13, %s950_s14  ;;  %p956_p2 = scmp.lt.s32.totalorder %s950_s14, %s950_s14 }
   0x7   :  { %p957_p3 = por %p956_p2, %p955_p1 }
   0x9   :  { %p958_p4 = pnand %p957_p3, %p951_p0 }
   0xb   :  { %961 = shalt.err (!%p958_p4)
}
   0xc   :  { %s1029_s15 = smov 128   ;;  %s1030_s16 = smov 8  }
   0xd   :  { %32 = dma.hbm_to_vmem [thread:$0]  %s1128_s1, 4096, %s27_s13, [#allocation6], %s1029_s15, %s1029_s15, %s1030_s16  }
   0xe   :  { %s1031_s19 = smov [#allocation2]   ;;  %s1032_s21 = smov [#allocation7]  }
   0xf   :  { %s17_s20 = sshll.u32 %s1031_s19, 4  ;;  %s38_s22 = sshll.u32 %s1032_s21, 4  ;;  %s18_s20 = int_to_ptr.vmem [resolvable:$true] %s17_s20  ;;  %s39_s22 = int_to_ptr.vmem [resolvable:$true] %s38_s22 }
  0x10   :  { %s970_s23 = scalar_lea.vmem %s18_s20, 128  ;;  %p975_p6 = scmp.lt.s32.totalorder %s18_s20, %s18_s20 }
  0x11   :  { %p971_p5 = scmp.ne.s32.totalorder %s18_s20, %s970_s23  ;;  %p976_p7 = scmp.lt.s32.totalorder %s970_s23, %s970_s23 }
  0x13   :  { %p977_p8 = por %p976_p7, %p975_p6 }
  0x15   :  { %p978_p9 = pnand %p977_p8, %p971_p5 }
  0x17   :  { %981 = shalt.err (!%p978_p9)
}
  0x18   :  { %20 = dma.hbm_to_vmem [thread:$0]  %s1127_s0, 128, %s18_s20, [#allocation3]  }
  0x19   :  { %s990_s26 = scalar_lea.vmem %s39_s22, 256  ;;  %p995_p11 = scmp.lt.s32.totalorder %s39_s22, %s39_s22 }
  0x1a   :  { %p991_p10 = scmp.ne.s32.totalorder %s39_s22, %s990_s26  ;;  %p996_p12 = scmp.lt.s32.totalorder %s990_s26, %s990_s26 }
  0x1c   :  { %p997_p13 = por %p996_p12, %p995_p11 }
  0x1e   :  { %p998_p0 = pnand %p997_p13, %p991_p10 }
  0x20   :  { %1001 = shalt.err (!%p998_p0)
}
  0x21   :  { %44 = dma.hbm_to_vmem [thread:$0]  %s1129_s2, 256, %s39_s22, [#allocation6], %s1029_s15, %s1029_s15, %s1030_s16  }
  0x22   :  { %1022 = dma.done.wait [#allocation3], 128  }
  0x23   :  { %1023 = vsyncadd [#allocation3], 4294967168 }
  0x24   :  { %1024 = dma.done.wait [#allocation6], 4352  }
  0x25   :  { %1025 = vsyncadd [#allocation6], 4294962944  ;;  %v1033_v0 = vmov 0.0   ;;  %vm1034_vm0 = vmmov 0   ;;  %vm55_vm1 = vcmask 261120   ;;  %v93_v1 = vld [vmem:[#allocation5 + $0x18] sm:$0xff] }
  0x26   :  { %844 = vmatprep.subr.mxu0 %v1033_v0  ;;  %852 = vmatprep.mubr.msk.f32.mxu0 %vm1034_vm0, %v1033_v0  ;;  %v92_v2 = vld [vmem:[#allocation5 + $0x10] sm:$0xff]  ;;  %v54_v3 = vld [vmem:[#allocation2] sm:$0xff]  ;;  %v91_v4 = vld [vmem:[#allocation5 + $0x8] sm:$0xff]  ;;  %s1035_s0 = smov [#allocation8]  }
  0x27   :  { %855 = vmatprep.subr.mxu1 %v1033_v0  ;;  %863 = vmatprep.mubr.msk.f32.mxu1 %vm1034_vm0, %v1033_v0  ;;  %v56_v5 = vsel %vm55_vm1, %v54_v3, 0.0  ;;  %v90_v7 = vld [vmem:[#allocation5] sm:$0xff]  ;;  %v178_v31 = vld [vmem:[#allocation5 + $0x38] sm:$0xff]  ;;  %v177_v32 = vld [vmem:[#allocation5 + $0x30] sm:$0xff]  ;;  %s776_s2 = sshll.u32 %s1035_s0, 4  ;;  %s777_s2 = int_to_ptr.vmem [resolvable:$true] %s776_s2 }
  0x28   :  { %845 = vmatpush3.msra.mxu0 %v93_v1  ;;  %v57_v6 = vrot.slane %v56_v5, 4  ;;  %v786_v26 = vld [vmem:[#allocation7] ss:$0 sm:$0xff]  ;;  %v787_v28 = vld [vmem:[#allocation7 + $0x1] ss:$0 sm:$0xff]  ;;  %856 = vmatpush3.msra.mxu1 %v178_v31  ;;  %v176_v33 = vld [vmem:[#allocation5 + $0x28] sm:$0xff]  ;;  %p1007_p2 = scmp.lt.s32.totalorder %s777_s2, %s777_s2 }
  0x29   :  { %846 = vmatprep.subr.mxu0 %v1033_v0  ;;  %857 = vmatprep.subr.mxu1 %v1033_v0  ;;  %v175_v34 = vld [vmem:[#allocation5 + $0x20] sm:$0xff]  ;;  %v263_v41 = vld [vmem:[#allocation5 + $0x58] sm:$0xff]  ;;  %v262_v42 = vld [vmem:[#allocation5 + $0x50] sm:$0xff]  ;;  %s1002_s28 = scalar_lea.vmem %s777_s2, 128 }
  0x2a   :  { %847 = vmatpush3.msra.mxu0 %v92_v2  ;;  %v58_v8 = vadd.f32 %v57_v6, %v56_v5  ;;  %858 = vmatpush3.msra.mxu1 %v177_v32  ;;  %v788_v35 = vld [vmem:[#allocation7 + $0x2] ss:$0 sm:$0xff]  ;;  %v261_v43 = vld [vmem:[#allocation5 + $0x48] sm:$0xff]  ;;  %v790_v45 = vld [vmem:[#allocation7 + $0x3] ss:$0 sm:$0xff]  ;;  %p1003_p1 = scmp.ne.s32.totalorder %s777_s2, %s1002_s28  ;;  %p1008_p3 = scmp.lt.s32.totalorder %s1002_s28, %s1002_s28 }
  0x2b   :  { %848 = vmatprep.subr.mxu0 %v1033_v0  ;;  %859 = vmatprep.subr.mxu1 %v1033_v0  ;;  %v260_v44 = vld [vmem:[#allocation5 + $0x40] sm:$0xff]  ;;  %v348_v51 = vld [vmem:[#allocation5 + $0x78] sm:$0xff]  ;;  %v347_v52 = vld [vmem:[#allocation5 + $0x70] sm:$0xff] }
  0x2c   :  { %849 = vmatpush3.msra.mxu0 %v91_v4  ;;  %v59_v9 = vrot.slane %v58_v8, 2  ;;  %860 = vmatpush3.msra.mxu1 %v176_v33  ;;  %v346_v53 = vld [vmem:[#allocation5 + $0x68] sm:$0xff]  ;;  %v345_v54 = vld [vmem:[#allocation5 + $0x60] sm:$0xff]  ;;  %v433_v61 = vld [vmem:[#allocation5 + $0x98] sm:$0xff]  ;;  %p1009_p4 = por %p1008_p3, %p1007_p2 }
  0x2d   :  { %850 = vmatprep.subr.mxu0 %v1033_v0  ;;  %861 = vmatprep.subr.mxu1 %v1033_v0  ;;  %v792_v55 = vld [vmem:[#allocation7 + $0x4] ss:$0 sm:$0xff]  ;;  %v432_v62 = vld [vmem:[#allocation5 + $0x90] sm:$0xff]  ;;  %v431_v63 = vld [vmem:[#allocation5 + $0x88] sm:$0xff] }
  0x2e   :  { %851 = vmatpush3.msra.mxu0 %v90_v7  ;;  %v60_v10 = vadd.f32 %v59_v9, %v58_v8  ;;  %862 = vmatpush3.msra.mxu1 %v175_v34  ;;  %v430_v1 = vld [vmem:[#allocation5 + $0x80] sm:$0xff]  ;;  %v518_v8 = vld [vmem:[#allocation5 + $0xb8] sm:$0xff]  ;;  %v517_v9 = vld [vmem:[#allocation5 + $0xb0] sm:$0xff]  ;;  %p1010_p5 = pnand %p1009_p4, %p1003_p1 }
  0x2f   :  { %866 = vmatprep.subr.mxu0 %v1033_v0  ;;  %877 = vmatprep.subr.mxu1 %v1033_v0  ;;  %v794_v2 = vld [vmem:[#allocation7 + $0x5] ss:$0 sm:$0xff]  ;;  %v800_v32 = vld [vmem:[#allocation7 + $0x8] ss:$0 sm:$0xff] }
  0x30   :  { %v61_v11 = vrot.slane %v60_v10, 1  ;;  %v685_v31 = vld [vmem:[#allocation5 + $0xe0] sm:$0xff] }
  0x32   :  { %v62_v12 = vadd.f32 %v61_v11, %v60_v10  ;;  %v516_v10 = vld [vmem:[#allocation5 + $0xa8] sm:$0xff]  ;;  %v515_v11 = vld [vmem:[#allocation5 + $0xa0] sm:$0xff] }
  0x34   :  { %v64_v13 = vmul.f32 0.125, %v62_v12  ;;  %v796_v12 = vld [vmem:[#allocation7 + $0x6] ss:$0 sm:$0xff] }
  0x36   :  { %v65_v14 = vsub.f32 %v54_v3, %v64_v13 }
  0x38   :  { %v66_v15 = vmul.f32 %v65_v14, %v65_v14 }
  0x3a   :  { %v67_v16 = vsel %vm55_vm1, %v66_v15, 0.0 }
  0x3b   :  { %v68_v17 = vrot.slane %v67_v16, 4 }
  0x3d   :  { %v69_v18 = vadd.f32 %v68_v17, %v67_v16 }
  0x3f   :  { %v70_v19 = vrot.slane %v69_v18, 2 }
  0x41   :  { %v71_v20 = vadd.f32 %v70_v19, %v69_v18  ;;  %v603_v18 = vld [vmem:[#allocation5 + $0xd8] sm:$0xff]  ;;  %v602_v19 = vld [vmem:[#allocation5 + $0xd0] sm:$0xff] }
  0x43   :  { %v72_v21 = vrot.slane %v71_v20, 1 }
  0x45   :  { %v73_v22 = vadd.f32 %v72_v21, %v71_v20  ;;  %v601_v20 = vld [vmem:[#allocation5 + $0xc8] sm:$0xff]  ;;  %v600_v21 = vld [vmem:[#allocation5 + $0xc0] sm:$0xff] }
  0x47   :  { %v74_v23 = vmul.f32 0.125, %v73_v22  ;;  %v798_v22 = vld [vmem:[#allocation7 + $0x7] ss:$0 sm:$0xff] }
  0x49   :  { %v75_v24 = vadd.f32 1e-05, %v74_v23 }
  0x4b   :  { %940 = vrsqrt.f32 %v75_v24 }
  0x58   :  { %v941_v25 = vpop.eup %940 }
  0x59   :  { %v77_v27 = vmul.f32 %v941_v25, %v65_v14 }
  0x5b   :  { %v83_v29 = vmul.f32 %v786_v26, %v77_v27 }
  0x5d   :  { %v89_v30 = vadd.f32 %v787_v28, %v83_v29  ;;  %v688_v28 = vld [vmem:[#allocation5 + $0xf8] sm:$0xff]  ;;  %v687_v29 = vld [vmem:[#allocation5 + $0xf0] sm:$0xff] }
  0x5f   :  { %853 = vmatmul.mubr.msk.f32.vlgmr.msra.gmra.mxu0 %vm55_vm1, %v89_v30  ;;  %v686_v30 = vld [vmem:[#allocation5 + $0xe8] sm:$0xff] }
  0x60   :  { %874 = vmatprep.mubr.msk.f32.mxu0 %vm1034_vm0, %v1033_v0  ;;  %867 = vmatpush3.msra.mxu0 %v263_v41 }
  0x61   :  { %868 = vmatprep.subr.mxu0 %v1033_v0 }
  0x62   :  { %869 = vmatpush3.msra.mxu0 %v262_v42 }
  0x63   :  { %870 = vmatprep.subr.mxu0 %v1033_v0 }
  0x64   :  { %871 = vmatpush3.msra.mxu0 %v261_v43 }
  0x65   :  { %872 = vmatprep.subr.mxu0 %v1033_v0 }
  0x66   :  { %873 = vmatpush3.msra.mxu0 %v260_v44 }
  0x67   :  { %888 = vmatprep.subr.mxu0 %v1033_v0 }
 0x11f   :  { %v168_v36 = vpop.f32.mrf.mxu0 }
 0x120   :  { %v169_v37 = vadd.f32 %v788_v35, %v168_v36 }
 0x121   :  { %v854_v38 = vpop.f32.mrf.mxu0 }
 0x122   :  { %v172_v39 = vmul.f32 0.2, %v169_v37  ;;  %v802_v38 = vld [vmem:[#allocation7 + $0x9] ss:$0 sm:$0xff] }
 0x124   :  { %v173_v40 = vmax.f32 %v169_v37, %v172_v39 }
 0x126   :  { %864 = vmatmul.mubr.msk.f32.vlgmr.msra.gmra.mxu1 %vm55_vm1, %v173_v40 }
 0x127   :  { %885 = vmatprep.mubr.msk.f32.mxu1 %vm1034_vm0, %v1033_v0  ;;  %878 = vmatpush3.msra.mxu1 %v348_v51 }
 0x128   :  { %879 = vmatprep.subr.mxu1 %v1033_v0 }
 0x129   :  { %880 = vmatpush3.msra.mxu1 %v347_v52 }
 0x12a   :  { %881 = vmatprep.subr.mxu1 %v1033_v0 }
 0x12b   :  { %882 = vmatpush3.msra.mxu1 %v346_v53 }
 0x12c   :  { %883 = vmatprep.subr.mxu1 %v1033_v0 }
 0x12d   :  { %884 = vmatpush3.msra.mxu1 %v345_v54 }
 0x12e   :  { %899 = vmatprep.subr.mxu1 %v1033_v0 }
 0x1e6   :  { %v253_v46 = vpop.f32.mrf.mxu1 }
 0x1e7   :  { %v254_v47 = vadd.f32 %v790_v45, %v253_v46 }
 0x1e8   :  { %v865_v48 = vpop.f32.mrf.mxu1 }
 0x1e9   :  { %v257_v49 = vmul.f32 0.2, %v254_v47 }
 0x1eb   :  { %v258_v50 = vmax.f32 %v254_v47, %v257_v49 }
 0x1ed   :  { %875 = vmatmul.mubr.msk.f32.vlgmr.msra.gmra.mxu0 %vm55_vm1, %v258_v50 }
 0x1ee   :  { %896 = vmatprep.mubr.msk.f32.mxu0 %vm1034_vm0, %v1033_v0  ;;  %889 = vmatpush3.msra.mxu0 %v433_v61 }
 0x1ef   :  { %890 = vmatprep.subr.mxu0 %v1033_v0 }
 0x1f0   :  { %891 = vmatpush3.msra.mxu0 %v432_v62 }
 0x1f1   :  { %892 = vmatprep.subr.mxu0 %v1033_v0 }
 0x1f2   :  { %893 = vmatpush3.msra.mxu0 %v431_v63 }
 0x1f3   :  { %894 = vmatprep.subr.mxu0 %v1033_v0 }
 0x1f4   :  { %895 = vmatpush3.msra.mxu0 %v430_v1 }
 0x1f5   :  { %910 = vmatprep.subr.mxu0 %v1033_v0 }
 0x2ad   :  { %v338_v56 = vpop.f32.mrf.mxu0 }
 0x2ae   :  { %v339_v57 = vadd.f32 %v792_v55, %v338_v56 }
 0x2af   :  { %v876_v58 = vpop.f32.mrf.mxu0 }
 0x2b0   :  { %v342_v59 = vmul.f32 0.2, %v339_v57 }
 0x2b2   :  { %v343_v60 = vmax.f32 %v339_v57, %v342_v59 }
 0x2b4   :  { %886 = vmatmul.mubr.msk.f32.vlgmr.msra.gmra.mxu1 %vm55_vm1, %v343_v60 }
 0x2b5   :  { %907 = vmatprep.mubr.msk.f32.mxu1 %vm1034_vm0, %v1033_v0  ;;  %900 = vmatpush3.msra.mxu1 %v518_v8 }
 0x2b6   :  { %901 = vmatprep.subr.mxu1 %v1033_v0 }
 0x2b7   :  { %902 = vmatpush3.msra.mxu1 %v517_v9 }
 0x2b8   :  { %903 = vmatprep.subr.mxu1 %v1033_v0 }
 0x2b9   :  { %904 = vmatpush3.msra.mxu1 %v516_v10 }
 0x2ba   :  { %905 = vmatprep.subr.mxu1 %v1033_v0 }
 0x2bb   :  { %906 = vmatpush3.msra.mxu1 %v515_v11 }
 0x2bc   :  { %921 = vmatprep.subr.mxu1 %v1033_v0 }
 0x374   :  { %v423_v3 = vpop.f32.mrf.mxu1 }
 0x375   :  { %v424_v4 = vadd.f32 %v794_v2, %v423_v3 }
 0x376   :  { %v887_v5 = vpop.f32.mrf.mxu1 }
 0x377   :  { %v427_v6 = vmul.f32 0.2, %v424_v4 }
 0x379   :  { %v428_v7 = vmax.f32 %v424_v4, %v427_v6 }
 0x37b   :  { %897 = vmatmul.mubr.msk.f32.vlgmr.msra.gmra.mxu0 %vm55_vm1, %v428_v7 }
 0x37c   :  { %918 = vmatprep.mubr.msk.f32.mxu0 %vm1034_vm0, %v1033_v0  ;;  %911 = vmatpush3.msra.mxu0 %v603_v18 }
 0x37d   :  { %912 = vmatprep.subr.mxu0 %v1033_v0 }
 0x37e   :  { %913 = vmatpush3.msra.mxu0 %v602_v19 }
 0x37f   :  { %914 = vmatprep.subr.mxu0 %v1033_v0 }
 0x380   :  { %915 = vmatpush3.msra.mxu0 %v601_v20 }
 0x381   :  { %916 = vmatprep.subr.mxu0 %v1033_v0 }
 0x382   :  { %917 = vmatpush3.msra.mxu0 %v600_v21 }
 0x43b   :  { %v508_v13 = vpop.f32.mrf.mxu0 }
 0x43c   :  { %v509_v14 = vadd.f32 %v796_v12, %v508_v13 }
 0x43d   :  { %v898_v15 = vpop.f32.mrf.mxu0 }
 0x43e   :  { %v512_v16 = vmul.f32 0.2, %v509_v14 }
 0x440   :  { %v513_v17 = vmax.f32 %v509_v14, %v512_v16 }
 0x442   :  { %908 = vmatmul.mubr.msk.f32.vlgmr.msra.gmra.mxu1 %vm55_vm1, %v513_v17 }
 0x443   :  { %929 = vmatprep.mubr.msk.f32.mxu1 %vm1034_vm0, %v1033_v0  ;;  %922 = vmatpush3.msra.mxu1 %v688_v28 }
 0x444   :  { %923 = vmatprep.subr.mxu1 %v1033_v0 }
 0x445   :  { %924 = vmatpush3.msra.mxu1 %v687_v29 }
 0x446   :  { %925 = vmatprep.subr.mxu1 %v1033_v0 }
 0x447   :  { %926 = vmatpush3.msra.mxu1 %v686_v30 }
 0x448   :  { %927 = vmatprep.subr.mxu1 %v1033_v0 }
 0x449   :  { %928 = vmatpush3.msra.mxu1 %v685_v31 }
 0x502   :  { %v593_v23 = vpop.f32.mrf.mxu1 }
 0x503   :  { %v594_v24 = vadd.f32 %v798_v22, %v593_v23 }
 0x504   :  { %v909_v25 = vpop.f32.mrf.mxu1 }
 0x505   :  { %v597_v26 = vmul.f32 0.2, %v594_v24 }
 0x507   :  { %v598_v27 = vmax.f32 %v594_v24, %v597_v26 }
 0x509   :  { %919 = vmatmul.mubr.msk.f32.vlgmr.msra.gmra.mxu0 %vm55_vm1, %v598_v27 }
 0x5c9   :  { %v678_v33 = vpop.f32.mrf.mxu0 }
 0x5ca   :  { %v679_v34 = vadd.f32 %v800_v32, %v678_v33 }
 0x5cb   :  { %v920_v35 = vpop.f32.mrf.mxu0 }
 0x5cc   :  { %v682_v36 = vmul.f32 0.2, %v679_v34 }
 0x5ce   :  { %v683_v37 = vmax.f32 %v679_v34, %v682_v36 }
 0x5d0   :  { %930 = vmatmul.mubr.msk.f32.vlgmr.msra.gmra.mxu1 %vm55_vm1, %v683_v37 }
 0x690   :  { %v763_v39 = vpop.f32.mrf.mxu1 }
 0x691   :  { %v764_v40 = vadd.f32 %v802_v38, %v763_v39 }
 0x692   :  { %v931_v41 = vpop.f32.mrf.mxu1 }
 0x693   :  { %v767_v42 = vmul.f32 0.2, %v764_v40 }
 0x695   :  { %v768_v43 = vmax.f32 %v764_v40, %v767_v42 }
 0x697   :  { %769 = vst.msk [vmem:[#allocation8] sm:$0xff] %vm55_vm1, %v768_v43 }
 0x698   :  { %1013 = shalt.err (!%p1010_p5)
}
 0x699   :  { %779 = dma.vmem_to_hbm [thread:$0]  %s777_s2, 128, %s1130_s3, [#allocation4]  }
 0x69a   :  { %1026 = dma.done.wait [#allocation4], 128  }
 0x69b   :  { %1027 = vsyncadd [#allocation4], 4294967168 }
 0x69c   :  { %783 = vsyncpa [#allocation3], 1 }
 0x69d   :  { %784 = vsyncpa [#allocation6], 1 }
 0x69e   :  { %785 = vsyncpa [#allocation4], 1 }

</bundles_post_ra>
